<compile_context>
chip_gen: v5e
topology: v5e:2x2
jax: 0.10.0
libtpu: 0.0.40
codegen_flags: <defaults>
</compile_context>

<pallas_src>
import jax
import jax.numpy as jnp
from jax import lax
from jax.experimental import pallas as pl
from jax.experimental.pallas import tpu as pltpu


def _make_pointconv_kernel(apply_dropout: bool, rate: float, total_cols: int):
    keep_prob = 1.0 - rate
    inv_keep = (1.0 / keep_prob) if keep_prob > 0.0 else 0.0

    # lowbias32-style integer mixer (all int32, wrap-around multiply under XLA).
    def _mix(h):
        h = jnp.bitwise_xor(h, lax.shift_right_logical(h, 16))
        h = h * jnp.int32(0x7FEB352D)
        h = jnp.bitwise_xor(h, lax.shift_right_logical(h, 15))
        h = h * jnp.int32(-2073614709)  # 0x846CA68B as signed int32
        h = jnp.bitwise_xor(h, lax.shift_right_logical(h, 16))
        return h

    def kernel(seed_ref, w_ref, b_ref, x_ref, o_ref):
        # 1x1 conv == channel matmul on the MXU: (C_out, C_in) @ (C_in, TN)
        acc = jnp.dot(w_ref[...], x_ref[...], preferred_element_type=jnp.float32)
        acc = acc + b_ref[...]  # bias (C_out, 1) broadcasts across lanes
        if apply_dropout:
            shape = acc.shape
            tn = shape[1]
            # Global flat element index (unique per output element across the grid).
            row = lax.broadcasted_iota(jnp.int32, shape, 0)
            col = lax.broadcasted_iota(jnp.int32, shape, 1)
            start = pl.program_id(0) * jnp.int32(tn)
            flat = row * jnp.int32(total_cols) + col + start
            # Mix with the seed (golden-ratio constant), then hash.
            h = flat + seed_ref[0] * jnp.int32(-1640531527)  # 0x9E3779B9 signed
            h = _mix(h)
            # Uniform in [0, 1) from the top 24 bits (exact in float32).
            u = lax.shift_right_logical(h, 8).astype(jnp.float32) * (
                1.0 / float(1 << 24)
            )
            acc = jnp.where(u < keep_prob, acc * inv_keep, 0.0)
        o_ref[...] = acc.astype(o_ref.dtype)

    return kernel


def point_conv2d(x, weight, bias, *, p=0.3, training=False, seed=0, tile_n=None):
    """PointConv2d.forward: dropout(conv1x1(x)).

    x: (N, C_in, H, W) float32
    weight: (C_out, C_in)   (== PyTorch Conv2d weight (C_out, C_in, 1, 1) squeezed)
    bias:   (C_out,)
    """
    N, C_in, H, W = x.shape
    C_out = weight.shape[0]
    L = N * H * W

    # Lane-dense layout: channels on sublanes, batch*spatial on lanes.
    x2 = jnp.transpose(x, (1, 0, 2, 3)).reshape(C_in, L)

    # Tile the lane axis: largest multiple of 128 under a ~2 MiB (in+out) tile
    # budget -> double-buffered tiles stay well inside the scoped VMEM default
    # on v5e/v6e (32/128 MiB) and v7x (32/64 MiB).
    if tile_n is None:
        budget_elems = (2 * 1024 * 1024) // (4 * max(C_in + C_out, 1))
        tile_n = max(128, min(4096, (budget_elems // 128) * 128))
    tile_n = min(tile_n, ((L + 127) // 128) * 128)
    Lp = ((L + tile_n - 1) // tile_n) * tile_n
    if Lp != L:
        x2 = jnp.pad(x2, ((0, 0), (0, Lp - L)))

    grid = (Lp // tile_n,)
    seed_arr = jnp.asarray([seed], dtype=jnp.int32)
    w2 = weight.astype(jnp.float32)
    b2 = bias.reshape(C_out, 1).astype(jnp.float32)

    kernel = _make_pointconv_kernel(bool(training) and p > 0.0, float(p), Lp)

    bytes_accessed = (C_in * Lp + C_out * Lp + w2.size + b2.size) * 4
    cost = pl.CostEstimate(
        flops=2 * C_in * C_out * Lp, transcendentals=0, bytes_accessed=bytes_accessed
    )

    out = pl.pallas_call(
        kernel,
        out_shape=jax.ShapeDtypeStruct((C_out, Lp), x.dtype),
        grid_spec=pltpu.PrefetchScalarGridSpec(
            num_scalar_prefetch=1,
            grid=grid,
            in_specs=[
                pl.BlockSpec((C_out, C_in), lambda i, seed: (0, 0)),   # weights resident
                pl.BlockSpec((C_out, 1), lambda i, seed: (0, 0)),      # bias resident
                pl.BlockSpec((C_in, tile_n), lambda i, seed: (0, i)),  # activations tiled
            ],
            out_specs=pl.BlockSpec((C_out, tile_n), lambda i, seed: (0, i)),
        ),
        compiler_params=pltpu.CompilerParams(
            dimension_semantics=("parallel",),  # shard lane tiles across v7x TCs
        ),
        cost_estimate=cost,
    )(seed_arr, w2, b2, x2)

    out = out[:, :L].reshape(C_out, N, H, W)
    return jnp.transpose(out, (1, 0, 2, 3))


if __name__ == "__main__":
    key = jax.random.PRNGKey(0)
    k1, k2, k3 = jax.random.split(key, 3)
    N, C_in, C_out, H, W = 2, 4, 8, 16, 16
    x = jax.random.normal(k1, (N, C_in, H, W), dtype=jnp.float32)
    w = jax.random.normal(k2, (C_out, C_in), dtype=jnp.float32) * 0.1
    b = jax.random.normal(k3, (C_out,), dtype=jnp.float32) * 0.1

    # Eval-mode forward (dropout is identity): check against pure-JAX reference.
    y = point_conv2d(x, w, b, p=0.3, training=False, tile_n=256)
    y = jax.block_until_ready(y)
    y_ref = jnp.einsum("oc,nchw->nohw", w, x) + b[None, :, None, None]
    assert y.shape == (N, C_out, H, W)
    assert y.dtype == x.dtype
    assert jnp.allclose(y, y_ref, atol=1e-5, rtol=1e-5)

    # Training-mode forward: inverted dropout computed inside the kernel.
    # TODO(synk): dropout mask uses an in-kernel counter hash, not PyTorch's RNG stream.
    y_tr = point_conv2d(x, w, b, p=0.3, training=True, seed=0, tile_n=256)
    y_tr = jax.block_until_ready(y_tr)
    assert y_tr.shape == (N, C_out, H, W)
    assert bool(jnp.all(jnp.isfinite(y_tr)))
    zero_frac = float(jnp.mean((y_tr == 0.0).astype(jnp.float32)))
    assert 0.05 < zero_frac < 0.7  # loose sanity band around p=0.3
    # Surviving elements are scaled by 1/(1-p): check they match scaled conv output.
    nz = y_tr != 0.0
    assert jnp.allclose(
        jnp.where(nz, y_tr, 0.0), jnp.where(nz, y_ref / 0.7, 0.0), atol=1e-4, rtol=1e-4
    )

    print("KERNEL_OK")
</pallas_src>

<mosaic_0001>
module attributes {stable_mosaic.version = 11 : i64} {
  func.func @kernel(%arg0: i32, %arg1: memref<1xi32, #tpu.memory_space<smem>>, %arg2: memref<8x4xf32, #tpu.memory_space<vmem>>, %arg3: memref<8x1xf32, #tpu.memory_space<vmem>>, %arg4: memref<4x256xf32, #tpu.memory_space<vmem>>, %arg5: memref<8x256xf32, #tpu.memory_space<vmem>>) attributes {dimension_semantics = [#tpu.dimension_semantics<parallel>], iteration_bounds = array<i64: 2>, scalar_prefetch = 1 : i64, scratch_operands = 0 : i64, tpu.core_type = #tpu.core_type<tc>, window_params = [{pipeline_mode = #tpu.pipeline_mode<synchronous>, transform_indices = @transform_0, window_bounds = array<i64: 8, 4>}, {pipeline_mode = #tpu.pipeline_mode<synchronous>, transform_indices = @transform_1, window_bounds = array<i64: 8, 1>}, {transform_indices = @transform_2, window_bounds = array<i64: 4, 256>}, {transform_indices = @transform_3, window_bounds = array<i64: 8, 256>}]} {
    %c0 = arith.constant 0 : index
    %c0_0 = arith.constant 0 : index
    %0 = vector.load %arg2[%c0, %c0_0] : memref<8x4xf32, #tpu.memory_space<vmem>>, vector<8x4xf32>
    %c0_1 = arith.constant 0 : index
    %c0_2 = arith.constant 0 : index
    %1 = vector.load %arg4[%c0_1, %c0_2] : memref<4x256xf32, #tpu.memory_space<vmem>>, vector<4x256xf32>
    %cst = arith.constant dense<0.000000e+00> : vector<8x256xf32>
    %2 = tpu.matmul %0, %1, %cst {dimension_numbers = #tpu.dot_dimension_numbers<[1], [0], [0], [1], [0, 0, 1, 1], [], []>} : vector<8x4xf32>, vector<4x256xf32>, vector<8x256xf32> -> vector<8x256xf32>
    %c0_3 = arith.constant 0 : index
    %c0_4 = arith.constant 0 : index
    %3 = vector.load %arg3[%c0_3, %c0_4] : memref<8x1xf32, #tpu.memory_space<vmem>>, vector<8x1xf32>
    %4 = vector.broadcast %3 : vector<8x1xf32> to vector<8x256xf32>
    %5 = arith.addf %2, %4 : vector<8x256xf32>
    %c0_5 = arith.constant 0 : index
    %c0_6 = arith.constant 0 : index
    %6 = vector.load %arg5[%c0_5, %c0_6] : memref<8x256xf32, #tpu.memory_space<vmem>>, vector<8x256xf32>
    tpu.vector_store %arg5[%c0_5, %c0_6], %5 {strides = array<i32>} : memref<8x256xf32, #tpu.memory_space<vmem>>, vector<8x256xf32>,
    return
  }
  func.func @transform_0(%arg0: i32, %arg1: memref<1xi32, #tpu.memory_space<smem>>) -> (i32, i32) {
    %c0_i32 = arith.constant 0 : i32
    %c0_i32_0 = arith.constant 0 : i32
    %c0_i32_1 = arith.constant 0 : i32
    return %c0_i32, %c0_i32_0 : i32, i32
  }
  func.func @transform_1(%arg0: i32, %arg1: memref<1xi32, #tpu.memory_space<smem>>) -> (i32, i32) {
    %c0_i32 = arith.constant 0 : i32
    %c0_i32_0 = arith.constant 0 : i32
    %c0_i32_1 = arith.constant 0 : i32
    return %c0_i32, %c0_i32_0 : i32, i32
  }
  func.func @transform_2(%arg0: i32, %arg1: memref<1xi32, #tpu.memory_space<smem>>) -> (i32, i32) {
    %c0_i32 = arith.constant 0 : i32
    %c0_i32_0 = arith.constant 0 : i32
    return %c0_i32, %arg0 : i32, i32
  }
  func.func @transform_3(%arg0: i32, %arg1: memref<1xi32, #tpu.memory_space<smem>>) -> (i32, i32) {
    %c0_i32 = arith.constant 0 : i32
    %c0_i32_0 = arith.constant 0 : i32
    return %c0_i32, %arg0 : i32, i32
  }
}

</mosaic_0001>

<bundles_post_ra>
// kernel: tpu_custom_call.1
= control target key start
LH: loop header
LB: loop body
LE: loop exit
PB: predicated region body
PF: predicated region fallthrough
CT: control target
= control target key end

     0   :  { %10 = vsyncpa [#allocation5], 0  ;;  %s551_s0 = inlined_call_operand.<no memory space> [shape: s32[1], index: 0, kind: input, shape index: {}]   ;;  %s552_s1 = inlined_call_operand.vmem [shape: f32[8,4], index: 1, kind: input, shape index: {}]   ;;  %s553_s2 = inlined_call_operand.vmem [shape: f32[8,1], index: 2, kind: input, shape index: {}]   ;;  %s554_s3 = inlined_call_operand.vmem [shape: f32[4,512], index: 3, kind: input, shape index: {}]   ;;  %s555_s4 = inlined_call_operand.hbm [shape: f32[8,512], index: 4, kind: output, shape index: {}]  }
   0x1   :  { %12 = vsyncpa [#allocation5 + $0x1], 0  ;;  %s461_s15 = smov 0   ;;  %s463_s16 = smov 0  }
   0x2   :  { %s465_s17 = smov 0   ;;  %s467_s0 = smov 0  }
   0x3 LB: > { %s482_s18 = sadd.s32 4294967295, %s433_s0   ;;  %s313_s19 = sadd.s32 4294967294, %s433_s0   ;;  %s433_s0 = sphi %s467_s0, %s561_s0   ;;  %s429_s17 = sphi %s465_s17, %s560_s17   ;;  %s425_s16 = sphi %s463_s16, %s559_s16   ;;  %s421_s15 = sphi %s461_s15, %s558_s15  }
   0x4   : > { %s486_s20 = sadd.s32 1, %s433_s0   ;;  %s93_s21 = sadd.s32 1, %s429_s17 }
   0x5   : > { %s90_s22 = ssub.s32 %s433_s0, %s486_s20  ;;  %p103_p0 = scmp.ne.s32.totalorder %s429_s17, %s425_s16 }
   0x6   : > { %p91_p1 = scmp.eq.s32.totalorder %s90_s22, 0  ;;  %p104_p2 = scmp.eq.s32.totalorder %s482_s18, 1 }
   0x7   : > { %p109_p3 = scmp.ne.s32.totalorder %s425_s16, %s421_s15  ;;  %p110_p4 = scmp.eq.s32.totalorder %s313_s19, 1 }
   0x8   : > { %s497_s23 = scalar_select %p91_p1, %s429_s17, %s93_s21  }
   0x9   : > { %p499_p5 = por %p104_p2, %p103_p0  ;;  %p503_p6 = por %p110_p4, %p109_p3 }
   0xa   : > { %p316_p7 = scmp.ge.s32.totalorder %s433_s0, 1  ;;  %p143_p8 = scmp.lt.s32.totalorder %s433_s0, 3 }
   0xc   : > { %p144_p9 = pnand %p316_p7, %p143_p8 }
   0xd   : > { %s318_s26 = sshll.u32 (!%p144_p9), %s482_s18, 1  ;;  %s164_s9 = sand.u32 (!%p144_p9), 1, %s425_s16  }
   0xe   : > { %147 = sbr.rel (%p144_p9) target bundleno = 164 (0xa4), region = 32  ;;  %p168_p10 = scmp.lt.s32.totalorder (!%p144_p9), %s318_s26, 3 }
   0xf   : > { %s317_s10 = sshll.u32 (!%p144_p9), %s164_s9, 4  ;;  %s329_s11 = sshll.u32 (!%p144_p9), %s482_s18, 4 }
  0x10   : > { %s249_s14 = scalar_lea.hbm (!%p144_p9), %s555_s4, %s329_s11  ;;  %s166_s19 = scalar_lea.vmem (!%p144_p9), [#allocation4], %s317_s10 }
  0x11   : > { %s251_s21 = sshll.u32 (!%p144_p9), %s166_s19, 4  ;;  %s253_s22 = sshll.u32 (!%p144_p9), %s249_s14, 4  ;;  %s252_s21 = int_to_ptr.vmem [resolvable:$true] %s251_s21  ;;  %s254_s22 = int_to_ptr.hbm [resolvable:$true] %s253_s22 }
  0x12   : > { %s385_s27 = sshra.s32 (!%p144_p9), %s254_s22, 4  ;;  %s391_s30 = scalar_lea.hbm (!%p144_p9), %s555_s4, 32  ;;  %s386_s27 = int_to_ptr.hbm [resolvable:$true] %s385_s27 }
  0x13   : > { %v176_v0 = vld [vmem:[%s553_s2] sm:$0xff]  ;;  %v435_v1 = vmov 0   ;;  %s563_s26 = smov (!%p168_p10, %s318_s26), 3  ;;  %vm190_vm0 = vcmask 1043456   ;;  %vm186_vm1 = vcmask 31744   ;;  %s387_s18 = scalar_lea.hbm %s386_s27, 16 }
  0x14   : > { %370 = vset.pattern.permute.xlu0 %v435_v1  ;;  %s319_s29 = sshll.u32 %s563_s26, 2  ;;  %v174_v3 = vld [vmem:[%s552_s1] sm:$0xff]  ;;  %s238_s26 = scalar_lea.sflag [#allocation5], %s164_s9 }
  0x15   : > { %179 = vperm.xlu0 %370, %v176_v0   ;;  %s171_s6 = scalar_lea.vmem %s554_s3, %s319_s29  ;;  %p388_p11 = scmp.ne.s32.totalorder %s386_s27, %s387_s18 }
  0x16   : > { %v175_v2 = vld [vmem:[%s171_s6] sm:$0xff]  ;;  %p392_p0 = scmp.lt.s32.totalorder %s386_s27, %s555_s4  ;;  %p393_p1 = scmp.lt.s32.totalorder %s391_s30, %s387_s18 }
  0x17   : > { %183 = vst [vmem:[#allocation1] ss:$2 sm:$0xff] %v175_v2  ;;  %p389_p12 = pnand %p388_p11, %p499_p5 }
  0x18   : > { %p394_p2 = por %p393_p1, %p392_p0 }
  0x19   : > { %p390_p13 = pneg %p389_p12 }
  0x1b   : > { %p395_p3 = pnand %p394_p2, %p390_p13 }
  0x1e   : > { %v184_v4 = vld.sshfl [vmem:[#allocation1] sm:$0xff pattern:$0x75316420]  ;;  %v185_v5 = vld.sshfl [vmem:[#allocation1 + $0x8] sm:$0xff pattern:$0x75316420] }
  0x1f   : > { %320 = vmatpush.msk.msra.mxu0 %vm190_vm0, %v184_v4  ;;  %322 = vmatpush.msk.msra.mxu1 %vm190_vm0, %v185_v5 }
  0x20   : > { %321 = vmatmul.msk.f32.vlgmr.msra.gmra.mxu0 %vm186_vm1, %v174_v3  ;;  %323 = vmatmul.msk.f32.vlgmr.msra.gmra.mxu1 %vm186_vm1, %v174_v3 }
  0x87   : > { %v180_v6 = vpop.permute.xlu0 %179 }
  0x9d   : > { %v212_v7 = vpop.f32.mrf.mxu0  ;;  %v232_v8 = vpop.f32.mrf.mxu1 }
  0x9e   : > { %v213_v9 = vadd.f32 %v212_v7, %v180_v6  ;;  %v233_v10 = vadd.f32 %v232_v8, %v180_v6 }
  0xa0   : > { %235 = vst [vmem:[%s166_s19] sm:$0xff] %v213_v9 }
  0xa1   : > { %236 = vst [vmem:[%s166_s19 + $0x8] sm:$0xff] %v233_v10 }
  0xa2   : > { %398 = shalt.err (!%p395_p3)
}
  0xa3   : > { %330 = dma.vmem_to_hbm [thread:$0]  (%p499_p5), %s252_s21, 256, %s254_s22, %s238_s26  }
  0xa4 PF: > { %p336_p4 = scmp.ge.s32.totalorder %s433_s0, 2  ;;  %s265_s7 = sand.u32 1, %s421_s15  }
  0xa5   : > { %s266_s8 = scalar_lea.sflag [#allocation5], %s265_s7 }
  0xa6   : > { %p333_p7 = pnand %p336_p4, %p503_p6 }
  0xa8   : > { %p334_p8 = pneg %p333_p7 }
  0xaa   : > { %416 = dma.done.wait (%p334_p8), %s266_s8, 256  }
  0xab   : > { %418 = vsyncadd (%p334_p8), %s266_s8, 4294967040  ;;  %p15_p9 = scmp.ge.s32.totalorder %s486_s20, 4   ;;  %s558_s15 = smov %s425_s16 }
  0xac   : > { %s559_s16 = smov %s429_s17  ;;  %s560_s17 = smov %s497_s23 }
  0xad   : > { %s561_s0 = smov %s486_s20  ;;  %17 = sbr.rel (!%p15_p9) target bundleno = 3 (0x3), region = 67 }
  0xb2   :  { %272 = vsyncpa [#allocation5], 1 }
  0xb3   :  { %274 = vsyncpa [#allocation5 + $0x1], 1 }

</bundles_post_ra>
